<compile_context>
chip_gen: v6e
topology: v6e:2x2x1
jax: 0.10.0
libtpu: 0.0.40
codegen_flags: <defaults>
</compile_context>

<pallas_src>
import math
from functools import partial

import jax
import jax.numpy as jnp
from jax.experimental import pallas as pl
from jax.experimental.pallas import tpu as pltpu


# ------------------------------- helpers -----------------------------------

def _round_up(x, m):
    return ((x + m - 1) // m) * m


def _pick_tile(n, target, align):
    """Largest `align`-multiple divisor of n that is <= target, else the full
    dim (always a legal block, possibly VMEM-heavy)."""
    if n <= target:
        return n
    t = (target // align) * align
    while t >= align:
        if n % t == 0:
            return t
        t -= align
    return n


def _choose_seq_tile(s, target, align):
    """(tile, needs_pad): aligned divisor of s <= target when one exists,
    otherwise signal that s must be padded to a bounded aligned tile."""
    if s <= target:
        return s, False
    t = (target // align) * align
    while t >= align:
        if s % t == 0:
            return t, False
        t -= align
    return target, True


def _vmem_capacity_bytes():
    try:
        return int(pltpu.get_tpu_info().vmem_capacity_bytes)
    except Exception:
        return 64 * 1024 * 1024   # v7x per-TC capacity: most conservative


# --------------------------- tiled linear kernel ----------------------------

def _matmul_bias_kernel(x_ref, w_ref, b_ref, o_ref, acc_ref, *, compute_dtype):
    @pl.when(pl.program_id(2) == 0)
    def _():
        acc_ref[...] = jnp.zeros_like(acc_ref)

    # Weights are pre-cast to compute_dtype outside the kernel; astype here is
    # a no-op for them.  Only the activation tile may need a cast.
    acc_ref[...] += jnp.dot(x_ref[...].astype(compute_dtype),
                            w_ref[...].astype(compute_dtype),
                            preferred_element_type=jnp.float32)

    @pl.when(pl.program_id(2) == pl.num_programs(2) - 1)
    def _():
        o_ref[...] = (acc_ref[...] + b_ref[...].astype(jnp.float32)).astype(o_ref.dtype)


def pallas_linear(x2d, w, b, *, compute_dtype=None, out_dtype=None,
                  tile_m=256, tile_n=512, tile_k=512):
    """y = x2d @ w + b, (M, N, K)-tiled MXU matmul with f32 accumulation."""
    M, K = x2d.shape
    Kw, N = w.shape
    assert K == Kw
    cd = compute_dtype or x2d.dtype
    od = out_dtype or x2d.dtype

    tm = M if M <= tile_m else tile_m            # ragged M handled by cdiv grid
    tn = _pick_tile(N, tile_n, 128)              # lane-dense output tiles
    tk = _pick_tile(K, tile_k, 128)

    return pl.pallas_call(
        partial(_matmul_bias_kernel, compute_dtype=cd),
        out_shape=jax.ShapeDtypeStruct((M, N), od),
        grid=(pl.cdiv(M, tm), N // tn, K // tk),
        in_specs=[
            pl.BlockSpec((tm, tk), lambda i, j, k: (i, k)),
            pl.BlockSpec((tk, tn), lambda i, j, k: (k, j)),
            pl.BlockSpec((1, tn), lambda i, j, k: (0, j)),
        ],
        out_specs=pl.BlockSpec((tm, tn), lambda i, j, k: (i, j)),
        scratch_shapes=[pltpu.VMEM((tm, tn), jnp.float32)],
        compiler_params=pltpu.CompilerParams(
            dimension_semantics=("parallel", "parallel", "arbitrary"),
            vmem_limit_bytes=32 * 1024 * 1024),
    )(x2d, w, b.reshape(1, N))


# --------------------------- flash attention kernel -------------------------

def _mha_flash_kernel(*refs, num_heads, causal):
    if causal:
        q_ref, k_ref, v_ref, o_ref, m_scr, l_scr, acc_scr = refs
        mask_ref = None
    else:
        q_ref, k_ref, v_ref, mask_ref, o_ref, m_scr, l_scr, acc_scr = refs

    tq, D = q_ref.shape              # q block:  (tq, D), lane-dense
    tk = k_ref.shape[0]              # kv block: (tk, D)
    dh = D // num_heads
    qi, ki = pl.program_id(1), pl.program_id(2)
    nk = pl.num_programs(2)

    @pl.when(ki == 0)
    def _():
        m_scr[...] = jnp.full_like(m_scr, -jnp.inf)
        l_scr[...] = jnp.zeros_like(l_scr)
        acc_scr[...] = jnp.zeros_like(acc_scr)

    def update():
        # Mask for this (q-block, k-block); shared across heads.
        if causal:
            q_pos = qi * tq + jax.lax.broadcasted_iota(jnp.int32, (tq, tk), 0)
            k_pos = ki * tk + jax.lax.broadcasted_iota(jnp.int32, (tq, tk), 1)
            keep = q_pos >= k_pos
        else:
            keep = mask_ref[...] > 0
        neg = jnp.float32(-1e10)

        # Heads looped in-kernel (static unroll).  Per-head (tq,dh)/(tk,dh)
        # slices are read straight from the VMEM refs so only ONE head's tiles
        # are live at a time -> no whole-block vreg spills.  1/sqrt(dh) is
        # already folded into the Q projection weights.
        # TODO(synk): for very large H switch to lax.fori_loop / batch the
        #             per-head matmuls with a leading H dim (v6e/v7x MXU fill).
        for h in range(num_heads):
            hs = slice(h * dh, (h + 1) * dh)
            s = jax.lax.dot_general(q_ref[:, hs], k_ref[:, hs],
                                    (((1,), (1,)), ((), ())),
                                    preferred_element_type=jnp.float32)   # (tq, tk)
            s = jnp.where(keep, s, neg)

            m_prev = m_scr[h]                                             # (tq, 1)
            m_new = jnp.maximum(m_prev, jnp.max(s, axis=-1, keepdims=True))
            alpha = jnp.exp(m_prev - m_new)
            p = jnp.exp(s - m_new)                                        # (tq, tk)
            l_scr[h] = alpha * l_scr[h] + jnp.sum(p, axis=-1, keepdims=True)
            pv = jnp.dot(p.astype(v_ref.dtype), v_ref[:, hs],
                         preferred_element_type=jnp.float32)              # (tq, dh)
            acc_scr[:, hs] = alpha * acc_scr[:, hs] + pv
            m_scr[h] = m_new

    if causal:
        # Blocks strictly above the diagonal: compute skipped here and their
        # K/V DMA is elided by the clamped index_map (same block re-used).
        @pl.when((qi + 1) * tq > ki * tk)
        def _():
            update()
    else:
        update()

    @pl.when(ki == nk - 1)
    def _():
        # Per-head normalization written into the lane-dense (tq, D) out block.
        for h in range(num_heads):
            hs = slice(h * dh, (h + 1) * dh)
            inv = pl.reciprocal(l_scr[h], approx=True)          # EUP, ~free
            o_ref[:, hs] = (acc_scr[:, hs] * inv).astype(o_ref.dtype)


def pallas_attention(qkv, mask, *, num_heads, causal):
    """qkv: (B, S, 3, D) fused buffer (heads contiguous); returns (B, S, D)."""
    B, S, three, D = qkv.shape
    assert three == 3
    H = num_heads
    assert causal or mask is not None
    has_mask = (mask is not None) and (not causal)

    itm = jnp.dtype(qkv.dtype).itemsize
    mask_itm = jnp.dtype(mask.dtype).itemsize if has_mask else 4
    cap = _vmem_capacity_bytes()
    budget = int(cap * 0.6)

    def _need(tq_, tk_):
        n = 2 * tq_ * D * itm                       # q, double-buffered
        n += 2 * 2 * tk_ * D * itm                  # k + v
        n += 2 * tq_ * D * itm                      # out
        if has_mask:
            n += 2 * tq_ * tk_ * mask_itm
        n += tq_ * D * 4 + 2 * H * tq_ * 4          # f32 scratch
        return n

    # Big q tiles (K/V streamed S/tq times) and MXU-filling k tiles, shrunk
    # only if the VMEM budget (64 MiB on v7x) demands it.
    tq_t, tk_t = 256, 256
    while _need(tq_t, tk_t) > budget and (tq_t > 128 or tk_t > 128):
        if tk_t > 128:
            tk_t //= 2
        else:
            tq_t //= 2

    min_item = min(itm, mask_itm) if has_mask else itm
    q_align = 8 * max(1, 4 // min_item)             # sublane alignment (packing)
    tq, pad_q = _choose_seq_tile(S, tq_t, q_align)
    tk, pad_k = _choose_seq_tile(S, tk_t, 128)

    S_pad = S
    if pad_q or pad_k:
        # No aligned divisor of S: pad once so K/V blocks stay bounded.
        tq = max(q_align, (tq_t // q_align) * q_align)
        tk = max(128, (tk_t // 128) * 128)
        S_pad = _round_up(S, math.lcm(tq, tk))
        qkv = jnp.pad(qkv, ((0, 0), (0, S_pad - S), (0, 0), (0, 0)))
        if has_mask:
            mask = jnp.pad(mask, ((0, 0), (0, S_pad - S), (0, S_pad - S)))

    nq, nk = S_pad // tq, S_pad // tk
    vmem_limit = int(min(cap * 0.9, max(2 * _need(tq, tk), 32 * 1024 * 1024)))

    # q/k/v selection is pure BlockSpec index arithmetic over the fused buffer;
    # causal K/V indices are clamped to the diagonal block (no DMA above it).
    def q_map(b, qi, ki):
        return (b, qi, 0, 0)

    def k_map(b, qi, ki):
        if causal:
            ki = jnp.minimum(ki, ((qi + 1) * tq - 1) // tk)
        return (b, ki, 1, 0)

    def v_map(b, qi, ki):
        if causal:
            ki = jnp.minimum(ki, ((qi + 1) * tq - 1) // tk)
        return (b, ki, 2, 0)

    in_specs = [
        pl.BlockSpec((None, tq, None, D), q_map),
        pl.BlockSpec((None, tk, None, D), k_map),
        pl.BlockSpec((None, tk, None, D), v_map),
    ]
    args = [qkv, qkv, qkv]
    if has_mask:
        in_specs.append(pl.BlockSpec((None, tq, tk), lambda b, qi, ki: (b, qi, ki)))
        args.append(mask)

    # TODO(synk): on v7x (2 TensorCores) add a head/finer-q parallel grid axis
    #             when B*nq is tiny (decode) so both cores stay busy.
    out = pl.pallas_call(
        partial(_mha_flash_kernel, num_heads=H, causal=causal),
        out_shape=jax.ShapeDtypeStruct((B, S_pad, D), qkv.dtype),
        grid=(B, nq, nk),
        in_specs=in_specs,
        out_specs=pl.BlockSpec((None, tq, D), lambda b, qi, ki: (b, qi, 0)),
        scratch_shapes=[
            pltpu.VMEM((H, tq, 1), jnp.float32),    # running max
            pltpu.VMEM((H, tq, 1), jnp.float32),    # running denom
            pltpu.VMEM((tq, D), jnp.float32),       # running accumulator (lane-dense)
        ],
        compiler_params=pltpu.CompilerParams(
            dimension_semantics=("parallel", "parallel", "arbitrary"),
            vmem_limit_bytes=vmem_limit),
    )(*args)
    return out[:, :S] if S_pad != S else out


# --------------------------- module wrapper ---------------------------------

def prepare_params(params, num_heads, *, compute_dtype=None):
    """One-time weight prep: (1) permute so heads are contiguous (h-major) in
    the feature axis -> no runtime head split/merge transposes, (2) fold
    1/sqrt(Dh) into the Q projection, (3) pre-cast weights to compute_dtype."""
    D = params["w_out"].shape[0]
    H = num_heads
    Dh = D // H
    # new feature position h*Dh + dh  <-  PyTorch .view(B,S,Dh,H) position dh*H + h
    d_perm = jnp.arange(D).reshape(Dh, H).T.reshape(-1)
    full_perm = jnp.concatenate([d_perm + c * D for c in range(3)])

    w_in = params["w_in"][:, full_perm]
    b_in = params["b_in"][full_perm]
    scale = 1.0 / math.sqrt(Dh)
    w_in = w_in.at[:, :D].multiply(scale)        # Q columns pre-scaled
    b_in = b_in.at[:D].multiply(scale)
    w_out = params["w_out"][d_perm, :]

    wd = compute_dtype or params["w_in"].dtype
    return {
        "w_in": w_in.astype(wd),
        "b_in": b_in,                            # biases stay f32 (added to f32 acc)
        "w_out": w_out.astype(wd),
        "b_out": params["b_out"],
    }


def self_mha_forward(prepped, xs, mask, num_heads, *, causal=False,
                     compute_dtype=None):
    B, S, D = xs.shape
    cd = compute_dtype or xs.dtype

    # Fused QKV projection, emitted in compute_dtype; columns already ordered
    # (3, D) with heads contiguous -> free reshape.
    qkv = pallas_linear(xs.reshape(B * S, D), prepped["w_in"], prepped["b_in"],
                        compute_dtype=cd, out_dtype=cd)
    qkv = qkv.reshape(B, S, 3, D)

    if mask is not None and not causal and jnp.dtype(mask.dtype).itemsize != 1:
        mask = (mask > 0).astype(jnp.int8)       # minimize mask HBM traffic

    # AtnDropout is identity in eval mode.
    o = pallas_attention(qkv, mask, num_heads=num_heads, causal=causal)   # (B,S,D)

    out = pallas_linear(o.reshape(B * S, D), prepped["w_out"], prepped["b_out"],
                        compute_dtype=cd, out_dtype=xs.dtype)
    return out.reshape(B, S, D)


# ------------------------------ pure-JAX ref ---------------------------------

def self_mha_reference(params, xs, mask, num_heads):
    B, S, D = xs.shape
    H = num_heads
    Dh = D // H
    qkv = xs @ params["w_in"] + params["b_in"]
    qs, ks, vs = jnp.split(qkv, 3, axis=-1)
    q = qs.reshape(B, S, Dh, H)
    k = ks.reshape(B, S, Dh, H)
    v = vs.reshape(B, S, Dh, H)
    w = jnp.einsum("bqdh,bkdh->bqkh", q, k) / math.sqrt(Dh)
    w = jnp.where(mask[:, :, :, None] > 0, w, -1e10)
    w = jax.nn.softmax(w, axis=-2)
    av = jnp.einsum("bqkh,bkdh->bqdh", w, v).reshape(B, S, D)
    return av @ params["w_out"] + params["b_out"]


# --------------------------------- main --------------------------------------

if __name__ == "__main__":
    B, S, D, H = 2, 8, 32, 4

    key = jax.random.PRNGKey(0)
    kx, kw1, kb1, kw2, kb2 = jax.random.split(key, 5)

    xs = jax.random.normal(kx, (B, S, D), dtype=jnp.float32)

    # PyTorch Linear(D, 3D) has weight (3D, D); we store the transpose (D, 3D)
    # so the kernel computes x @ W^T + b directly.
    params = {
        "w_in": jax.random.normal(kw1, (D, 3 * D), dtype=jnp.float32) * 0.1,
        "b_in": jax.random.normal(kb1, (3 * D,), dtype=jnp.float32) * 0.1,
        "w_out": jax.random.normal(kw2, (D, D), dtype=jnp.float32) * 0.1,
        "b_out": jax.random.normal(kb2, (D,), dtype=jnp.float32) * 0.1,
    }
    prepped = prepare_params(params, num_heads=H)                       # f32 weights
    prepped_bf16 = prepare_params(params, num_heads=H,
                                  compute_dtype=jnp.bfloat16)           # bf16 weights

    # Causal mask (B, S, S): 1 = attend, 0 = masked.
    mask = jnp.broadcast_to(jnp.tril(jnp.ones((S, S), jnp.float32)), (B, S, S))
    ref = self_mha_reference(params, xs, mask, num_heads=H)

    # 1) causal fast path: mask generated in-kernel, K/V DMAs clamped at diag.
    out = jax.block_until_ready(
        self_mha_forward(prepped, xs, None, num_heads=H, causal=True))
    assert out.shape == (B, S, D)
    assert jnp.allclose(out, ref, atol=2e-3, rtol=2e-3), "causal path mismatch"

    # 2) explicit data-dependent mask path (int8 mask through a BlockSpec).
    out_m = jax.block_until_ready(
        self_mha_forward(prepped, xs, (mask > 0).astype(jnp.int8),
                         num_heads=H, causal=False))
    assert jnp.allclose(out_m, ref, atol=2e-3, rtol=2e-3), "masked path mismatch"

    # 3) bf16 path: bf16 weights, bf16 qkv / attention output, f32 accumulation.
    out_bf16 = jax.block_until_ready(
        self_mha_forward(prepped_bf16, xs, None, num_heads=H, causal=True,
                         compute_dtype=jnp.bfloat16))
    assert jnp.allclose(out_bf16, ref, atol=5e-2, rtol=5e-2), "bf16 path mismatch"

    print("KERNEL_OK")
</pallas_src>

<mosaic_0001>
module attributes {stable_mosaic.version = 11 : i64} {
  func.func @_matmul_bias_kernel(%arg0: i32, %arg1: i32, %arg2: i32, %arg3: memref<16x32xf32, #tpu.memory_space<vmem>>, %arg4: memref<32x96xf32, #tpu.memory_space<vmem>>, %arg5: memref<1x96xf32, #tpu.memory_space<vmem>>, %arg6: memref<16x96xf32, #tpu.memory_space<vmem>>, %arg7: memref<16x96xf32, #tpu.memory_space<vmem>>) attributes {dimension_semantics = [#tpu.dimension_semantics<parallel>, #tpu.dimension_semantics<parallel>, #tpu.dimension_semantics<arbitrary>], iteration_bounds = array<i64: 1, 1, 1>, scalar_prefetch = 0 : i64, scratch_operands = 1 : i64, tpu.core_type = #tpu.core_type<tc>, window_params = [{transform_indices = @transform_0, window_bounds = array<i64: 16, 32>}, {transform_indices = @transform_1, window_bounds = array<i64: 32, 96>}, {transform_indices = @transform_2, window_bounds = array<i64: 1, 96>}, {transform_indices = @transform_3, window_bounds = array<i64: 16, 96>}]} {
    %c0_i32 = arith.constant 0 : i32
    %0 = arith.cmpi eq, %arg2, %c0_i32 : i32
    %1 = arith.extui %0 : i1 to i32
    %c0_i32_0 = arith.constant 0 : i32
    %2 = arith.cmpi ne, %1, %c0_i32_0 : i32
    scf.if %2 {
      %cst_10 = arith.constant 0.000000e+00 : f32
      %12 = vector.broadcast %cst_10 : f32 to vector<16x96xf32>
      %c0_11 = arith.constant 0 : index
      %c0_12 = arith.constant 0 : index
      %13 = vector.load %arg7[%c0_11, %c0_12] : memref<16x96xf32, #tpu.memory_space<vmem>>, vector<16x96xf32>
      tpu.vector_store %arg7[%c0_11, %c0_12], %12 {strides = array<i32>} : memref<16x96xf32, #tpu.memory_space<vmem>>, vector<16x96xf32>,
    } else {
    }
    %c0 = arith.constant 0 : index
    %c0_1 = arith.constant 0 : index
    %3 = vector.load %arg7[%c0, %c0_1] : memref<16x96xf32, #tpu.memory_space<vmem>>, vector<16x96xf32>
    %c0_2 = arith.constant 0 : index
    %c0_3 = arith.constant 0 : index
    %4 = vector.load %arg3[%c0_2, %c0_3] : memref<16x32xf32, #tpu.memory_space<vmem>>, vector<16x32xf32>
    %c0_4 = arith.constant 0 : index
    %c0_5 = arith.constant 0 : index
    %5 = vector.load %arg4[%c0_4, %c0_5] : memref<32x96xf32, #tpu.memory_space<vmem>>, vector<32x96xf32>
    %cst = arith.constant dense<0.000000e+00> : vector<16x96xf32>
    %6 = tpu.matmul %4, %5, %cst {dimension_numbers = #tpu.dot_dimension_numbers<[1], [0], [0], [1], [0, 0, 1, 1], [], []>} : vector<16x32xf32>, vector<32x96xf32>, vector<16x96xf32> -> vector<16x96xf32>
    %7 = arith.addf %3, %6 : vector<16x96xf32>
    %c0_6 = arith.constant 0 : index
    %c0_7 = arith.constant 0 : index
    %8 = vector.load %arg7[%c0_6, %c0_7] : memref<16x96xf32, #tpu.memory_space<vmem>>, vector<16x96xf32>
    tpu.vector_store %arg7[%c0_6, %c0_7], %7 {strides = array<i32>} : memref<16x96xf32, #tpu.memory_space<vmem>>, vector<16x96xf32>,
    %c0_i32_8 = arith.constant 0 : i32
    %9 = arith.cmpi eq, %arg2, %c0_i32_8 : i32
    %10 = arith.extui %9 : i1 to i32
    %c0_i32_9 = arith.constant 0 : i32
    %11 = arith.cmpi ne, %10, %c0_i32_9 : i32
    scf.if %11 {
      %c0_10 = arith.constant 0 : index
      %c0_11 = arith.constant 0 : index
      %12 = vector.load %arg7[%c0_10, %c0_11] : memref<16x96xf32, #tpu.memory_space<vmem>>, vector<16x96xf32>
      %c0_12 = arith.constant 0 : index
      %c0_13 = arith.constant 0 : index
      %13 = vector.load %arg5[%c0_12, %c0_13] : memref<1x96xf32, #tpu.memory_space<vmem>>, vector<1x96xf32>
      %14 = vector.broadcast %13 : vector<1x96xf32> to vector<16x96xf32>
      %15 = arith.addf %12, %14 : vector<16x96xf32>
      %c0_14 = arith.constant 0 : index
      %c0_15 = arith.constant 0 : index
      %16 = vector.load %arg6[%c0_14, %c0_15] : memref<16x96xf32, #tpu.memory_space<vmem>>, vector<16x96xf32>
      tpu.vector_store %arg6[%c0_14, %c0_15], %15 {strides = array<i32>} : memref<16x96xf32, #tpu.memory_space<vmem>>, vector<16x96xf32>,
    } else {
    }
    return
  }
  func.func @transform_0(%arg0: i32, %arg1: i32, %arg2: i32) -> (i32, i32) {
    %c0_i32 = arith.constant 0 : i32
    return %arg0, %arg2 : i32, i32
  }
  func.func @transform_1(%arg0: i32, %arg1: i32, %arg2: i32) -> (i32, i32) {
    %c0_i32 = arith.constant 0 : i32
    return %arg2, %arg1 : i32, i32
  }
  func.func @transform_2(%arg0: i32, %arg1: i32, %arg2: i32) -> (i32, i32) {
    %c0_i32 = arith.constant 0 : i32
    %c0_i32_0 = arith.constant 0 : i32
    return %c0_i32, %arg1 : i32, i32
  }
  func.func @transform_3(%arg0: i32, %arg1: i32, %arg2: i32) -> (i32, i32) {
    %c0_i32 = arith.constant 0 : i32
    return %arg0, %arg1 : i32, i32
  }
}

</mosaic_0001>

<bundles_post_ra>
// kernel: tpu_custom_call.1
= control target key start
LH: loop header
LB: loop body
LE: loop exit
PB: predicated region body
PF: predicated region fallthrough
CT: control target
= control target key end

     0   :  { %8 = vsyncpa [#allocation4], 0  ;;  %s326_s0 = inlined_call_operand.hbm [shape: f32[16,32], index: 0, kind: input, shape index: {}]   ;;  %s327_s1 = inlined_call_operand.hbm [shape: f32[32,96], index: 1, kind: input, shape index: {}]   ;;  %s328_s2 = inlined_call_operand.vmem [shape: f32[1,96], index: 2, kind: input, shape index: {}]   ;;  %s329_s3 = inlined_call_operand.hbm [shape: f32[16,96], index: 3, kind: output, shape index: {}]  }
   0x1   :  { %9 = vsyncpa [#allocation7], 0 }
   0x2   :  { %10 = vsyncpa [#allocation5], 0  ;;  %s271_s12 = smov [#allocation3]  }
   0x3   :  { %s16_s13 = sshll.u32 %s271_s12, 4  ;;  %s17_s13 = int_to_ptr.vmem [resolvable:$true] %s16_s13 }
   0x4   :  { %s213_s14 = scalar_lea.vmem %s17_s13, 256  ;;  %p218_p1 = scmp.lt.s32.totalorder %s17_s13, %s17_s13 }
   0x5   :  { %p214_p0 = scmp.ne.s32.totalorder %s17_s13, %s213_s14  ;;  %p219_p2 = scmp.lt.s32.totalorder %s213_s14, %s213_s14 }
   0x7   :  { %p220_p3 = por %p219_p2, %p218_p1 }
   0x9   :  { %p221_p4 = pnand %p220_p3, %p214_p0 }
   0xb   :  { %224 = shalt.err (!%p221_p4)
}
   0xc   :  { %s272_s15 = smov 128   ;;  %s273_s16 = smov 8  }
   0xd   :  { %22 = dma.hbm_to_vmem [thread:$0]  %s326_s0, 256, %s17_s13, [#allocation4], %s272_s15, %s272_s15, %s273_s16  }
   0xe   :  { %s274_s19 = smov [#allocation6]  }
   0xf   :  { %s28_s20 = sshll.u32 %s274_s19, 4  ;;  %s29_s20 = int_to_ptr.vmem [resolvable:$true] %s28_s20 }
  0x10   :  { %s233_s21 = scalar_lea.vmem %s29_s20, 512  ;;  %p238_p6 = scmp.lt.s32.totalorder %s29_s20, %s29_s20 }
  0x11   :  { %p234_p5 = scmp.ne.s32.totalorder %s29_s20, %s233_s21  ;;  %p239_p7 = scmp.lt.s32.totalorder %s233_s21, %s233_s21 }
  0x13   :  { %p240_p8 = por %p239_p7, %p238_p6 }
  0x15   :  { %p241_p9 = pnand %p240_p8, %p234_p5 }
  0x17   :  { %244 = shalt.err (!%p241_p9)
}
  0x18   :  { %34 = dma.hbm_to_vmem [thread:$0]  %s327_s1, 512, %s29_s20, [#allocation7], %s272_s15, %s272_s15, %s273_s16  }
  0x19   :  { %265 = dma.done.wait [#allocation4], 256  }
  0x1a   :  { %266 = vsyncadd [#allocation4], 4294967040 }
  0x1b   :  { %267 = dma.done.wait [#allocation7], 512  }
  0x1c   :  { %268 = vsyncadd [#allocation7], 4294966784  ;;  %vm47_vm0 = vcmask 785408   ;;  %v275_v0 = vmov 0.0   ;;  %vm58_vm1 = vcmask 261120   ;;  %v57_v1 = vld [vmem:[#allocation6 + $0x18] sm:$0xff] }
  0x1d   :  { %49 = vst.msk [vmem:[#allocation2 + $0x8] sm:$0xff] %vm47_vm0, %v275_v0  ;;  %48 = vst.msk [vmem:[#allocation2] sm:$0xff] %vm47_vm0, %v275_v0  ;;  %v56_v2 = vld [vmem:[#allocation6 + $0x10] sm:$0xff]  ;;  %188 = vmatprep.subr.mxu0 %v57_v1  ;;  %v55_v4 = vld [vmem:[#allocation6 + $0x8] sm:$0xff]  ;;  %s276_s24 = smov [#allocation8]  }
  0x1e   :  { %v52_v3 = vld [vmem:[#allocation3] sm:$0xff]  ;;  %189 = vmatpush3.msra.mxu0 %v57_v1  ;;  %v54_v5 = vld [vmem:[#allocation6] sm:$0xff]  ;;  %v53_v6 = vld [vmem:[#allocation3 + $0x8] sm:$0xff]  ;;  %s166_s25 = sshll.u32 %s276_s24, 4  ;;  %s167_s25 = int_to_ptr.vmem [resolvable:$true] %s166_s25 }
  0x1f   :  { %196 = vmatprep.mubr.msk.f32.mxu0 %vm58_vm1, %v52_v3  ;;  %190 = vmatprep.subr.mxu0 %v56_v2  ;;  %v181_v13 = vld [vmem:[%s328_s2] ss:$0 sm:$0xff]  ;;  %s245_s26 = scalar_lea.vmem %s167_s25, 256  ;;  %p250_p11 = scmp.lt.s32.totalorder %s167_s25, %s167_s25 }
  0x20   :  { %191 = vmatpush3.msra.mxu0 %v56_v2  ;;  %p246_p10 = scmp.ne.s32.totalorder %s167_s25, %s245_s26  ;;  %p251_p12 = scmp.lt.s32.totalorder %s245_s26, %s245_s26 }
  0x21   :  { %192 = vmatprep.subr.mxu0 %v55_v4 }
  0x22   :  { %193 = vmatpush3.msra.mxu0 %v55_v4  ;;  %p252_p13 = por %p251_p12, %p250_p11 }
  0x23   :  { %194 = vmatprep.subr.mxu0 %v54_v5 }
  0x24   :  { %195 = vmatpush3.msra.mxu0 %v54_v5  ;;  %v51_v7 = vld [vmem:[#allocation2 + $0x8] sm:$0xff]  ;;  %v50_v9 = vld [vmem:[#allocation2] sm:$0xff]  ;;  %p253_p0 = pnand %p252_p13, %p246_p10 }
  0x25   :  { %197 = vmatmul.mubr.msk.f32.vlgmr.msra.gmra.mxu0 %vm58_vm1, %v53_v6 }
  0xe5   :  { %v198_v8 = vpop.f32.mrf.mxu0 }
  0xe6   :  { %v141_v10 = vadd.f32 %v198_v8, %v51_v7 }
  0xe7   :  { %v131_v11 = vpop.f32.mrf.mxu0 }
  0xe8   :  { %144 = vst.msk [vmem:[#allocation2 + $0x8] sm:$0xff] %vm47_vm0, %v141_v10  ;;  %v140_v12 = vadd.f32 %v131_v11, %v50_v9 }
  0xea   :  { %143 = vst.msk [vmem:[#allocation2] sm:$0xff] %vm47_vm0, %v140_v12 }
  0xef   :  { %v149_v14 = vld [vmem:[#allocation2 + $0x8] sm:$0xff] }
  0xf0   :  { %v158_v15 = vadd.f32 %v181_v13, %v149_v14 }
  0xf1   :  { %v148_v16 = vld [vmem:[#allocation2] sm:$0xff] }
  0xf2   :  { %v157_v17 = vadd.f32 %v181_v13, %v148_v16  ;;  %160 = vst.msk [vmem:[#allocation8 + $0x8] sm:$0xff] %vm47_vm0, %v158_v15 }
  0xf4   :  { %159 = vst.msk [vmem:[#allocation8] sm:$0xff] %vm47_vm0, %v157_v17 }
  0xf5   :  { %256 = shalt.err (!%p253_p0)
}
  0xf6   :  { %172 = dma.vmem_to_hbm [thread:$0]  %s167_s25, 256, %s329_s3, [#allocation5], %s272_s15, %s272_s15, %s273_s16  }
  0xf7   :  { %269 = dma.done.wait [#allocation5], 256  }
  0xf8   :  { %270 = vsyncadd [#allocation5], 4294967040 }
  0xf9   :  { %176 = vsyncpa [#allocation4], 1 }
  0xfa   :  { %177 = vsyncpa [#allocation7], 1 }
  0xfb   :  { %178 = vsyncpa [#allocation5], 1 }

</bundles_post_ra>
